<compile_context>
chip_gen: v5e
topology: v5e:2x2
jax: 0.10.0
libtpu: 0.0.40
codegen_flags: <defaults>
</compile_context>

<pallas_src>
import functools

import jax
import jax.numpy as jnp
import numpy as np
from jax.experimental import pallas as pl
from jax.experimental.pallas import tpu as pltpu


def _round_up(x, m):
    return ((x + m - 1) // m) * m


# ---------------------------------------------------------------------------
# Phase 1: accumulate per-cluster aggregated similarities over memory tiles.
# ---------------------------------------------------------------------------
def _partial_agg_kernel(x_ref, feat_ref, labels_ref, agg_ref, xn_ref,
                        *, num_classes_padded, compute_dtype):
    k = pl.program_id(1)          # reduction step over the M tiles of this split

    @pl.when(k == 0)
    def _init():
        # F.normalize(inputs, p=2, dim=1): done once per split, cached in VMEM.
        x = x_ref[...]                                                # (B, Fp) f32
        ssq = jnp.sum(x * x, axis=1, keepdims=True)
        xn_ref[...] = (x * jax.lax.rsqrt(jnp.maximum(ssq, 1e-24))).astype(compute_dtype)
        agg_ref[...] = jnp.zeros_like(agg_ref)

    # HM forward for this tile: scores = xn @ feat_tile.T  (MXU, f32 accumulation).
    scores = jax.lax.dot_general(
        xn_ref[...], feat_ref[...], (((1,), (1,)), ((), ())),
        preferred_element_type=jnp.float32)                           # (B, TILE_M)

    # sim.index_add_(0, labels, inputs.t())  ==  scores @ one_hot(labels_tile)
    labels = labels_ref[...]                                          # (TILE_M, 1) i32
    tile_m = labels.shape[0]
    cls_iota = jax.lax.broadcasted_iota(jnp.int32, (tile_m, num_classes_padded), 1)
    onehot = (labels == cls_iota).astype(compute_dtype)               # (TILE_M, Cp)

    # 1/temp and the per-cluster mean are linear, so they are applied in the
    # epilogue; keeping scores in [-1, 1] here is bf16-friendly.
    agg_ref[...] += jnp.dot(scores.astype(compute_dtype), onehot,
                            preferred_element_type=jnp.float32)       # (B, Cp) f32


# ---------------------------------------------------------------------------
# Phase 2: per-cluster mean, masked softmax, NLL.
# ---------------------------------------------------------------------------
def _loss_epilogue_kernel(partial_ref, counts_ref, targets_ref, out_ref,
                          *, temp, batch):
    agg = jnp.sum(partial_ref[...], axis=0)                           # (B, Cp) f32
    counts = counts_ref[...]                                          # (1, Cp)
    mask = (counts > 0.0).astype(jnp.float32)
    denom = mask * counts + (1.0 - mask)
    # per-cluster mean, then the /temp of the reference (EUP reciprocal).
    sim = agg * (pl.reciprocal(denom, approx=True) * (1.0 / temp))    # (B, Cp)

    # masked softmax over clusters.
    # TODO(synk): faithful to the reference there is no row-max subtraction, so
    # exp() can overflow f32 for much smaller temp / un-normalized features.
    exps = jnp.exp(sim) * mask
    sums = jnp.sum(exps, axis=1, keepdims=True) + 1e-6
    probs = exps * pl.reciprocal(sums, approx=True)

    # nll_loss(log(probs + 1e-6), targets), reduction='mean'
    tgt = targets_ref[...]                                            # (B, 1) int32
    b, c = probs.shape
    t_iota = jax.lax.broadcasted_iota(jnp.int32, (b, c), 1)
    picked = jnp.sum(jnp.where(tgt == t_iota, probs, 0.0), axis=1, keepdims=True)
    out_ref[...] = (-jnp.sum(jnp.log(picked + 1e-6), axis=0, keepdims=True)
                    * (1.0 / batch))


# ---------------------------------------------------------------------------
# Wrapper
# ---------------------------------------------------------------------------
def hybrid_memory_loss(inputs, features, labels, indexes, temp, num_classes,
                       *, tile_m=512, num_splits=2, compute_dtype=jnp.bfloat16):
    """HybridMemory.forward(results, indexes) -> scalar NLL loss.

    `num_classes` must be a static Python int (= labels.max()+1 from the
    clustering step) so there is no device->host sync / retrace per call.
    """
    inputs = jnp.asarray(inputs, jnp.float32)
    features = jnp.asarray(features)
    labels = jnp.asarray(labels, jnp.int32)
    indexes = jnp.asarray(indexes, jnp.int32)

    B, F = inputs.shape
    M = features.shape[0]
    C = int(num_classes)

    # Lane-dense padding; M padded to a whole number of tiles per split.
    F_pad = _round_up(F, 128)
    C_pad = _round_up(max(C, 1), 128)
    tile_m = min(tile_m, _round_up(M, 8))
    M_pad = _round_up(M, tile_m * num_splits)
    m_tiles_per_split = (M_pad // tile_m) // num_splits

    x_p = jnp.pad(inputs, ((0, 0), (0, F_pad - F)))
    feat_p = jnp.pad(features.astype(jnp.float32),
                     ((0, M_pad - M), (0, F_pad - F))).astype(compute_dtype)
    labels_p = jnp.pad(labels, (0, M_pad - M)).reshape(M_pad, 1)

    # Label-only quantities (static until re-clustering): counts + gathered targets.
    counts = jnp.zeros((C_pad,), jnp.float32).at[labels].add(1.0).reshape(1, C_pad)
    targets = labels[indexes].reshape(B, 1)

    # VMEM budget estimate (double-buffered tiles + resident blocks + intermediates),
    # capped at 48 MiB so the same config also fits v7x's 64 MiB VMEM.
    isz = int(np.dtype(compute_dtype).itemsize)
    est = (2 * tile_m * F_pad * isz          # feature tiles (double-buffered)
           + 2 * tile_m * 128 * 4            # label tiles (lane-padded int32)
           + 2 * B * F_pad * 4               # inputs block
           + B * F_pad * isz                 # normalized-inputs scratch
           + 2 * B * C_pad * 4               # resident (B, C) accumulator block
           + B * tile_m * 4                  # scores intermediate
           + tile_m * C_pad * isz)           # one-hot intermediate
    vmem_limit = int(min(max(2 * est, 8 * 1024 * 1024), 48 * 1024 * 1024))

    kern1 = functools.partial(_partial_agg_kernel,
                              num_classes_padded=C_pad,
                              compute_dtype=compute_dtype)
    partial = pl.pallas_call(
        kern1,
        out_shape=jax.ShapeDtypeStruct((num_splits, B, C_pad), jnp.float32),
        grid_spec=pltpu.PrefetchScalarGridSpec(
            num_scalar_prefetch=0,
            grid=(num_splits, m_tiles_per_split),
            in_specs=[
                pl.BlockSpec((B, F_pad), lambda c, k: (0, 0)),
                pl.BlockSpec((tile_m, F_pad),
                             lambda c, k: (c * m_tiles_per_split + k, 0)),
                pl.BlockSpec((tile_m, 1),
                             lambda c, k: (c * m_tiles_per_split + k, 0)),
            ],
            out_specs=pl.BlockSpec((None, B, C_pad), lambda c, k: (c, 0, 0)),
            scratch_shapes=[pltpu.VMEM((B, F_pad), compute_dtype)],
        ),
        compiler_params=pltpu.CompilerParams(
            dimension_semantics=("parallel", "arbitrary"),
            vmem_limit_bytes=vmem_limit,
        ),
    )(x_p, feat_p, labels_p)

    kern2 = functools.partial(_loss_epilogue_kernel, temp=float(temp), batch=B)
    vmem = pl.BlockSpec(memory_space=pltpu.MemorySpace.VMEM)
    out = pl.pallas_call(
        kern2,
        out_shape=jax.ShapeDtypeStruct((1, 1), jnp.float32),
        in_specs=[vmem, vmem, vmem],
        out_specs=vmem,
    )(partial, counts, targets)
    return out[0, 0]


# ---------------------------------------------------------------------------
# Pure-JAX reference mirroring the PyTorch forward (optionally with the same
# bf16 matmul-input policy as the kernel).
# ---------------------------------------------------------------------------
def reference_loss(inputs, features, labels, indexes, temp, num_classes,
                   compute_dtype=jnp.float32):
    x = inputs * jax.lax.rsqrt(
        jnp.maximum(jnp.sum(inputs * inputs, axis=1, keepdims=True), 1e-24))
    xc = x.astype(compute_dtype)
    fc = features.astype(compute_dtype)
    scores = jax.lax.dot_general(xc, fc, (((1,), (1,)), ((), ())),
                                 preferred_element_type=jnp.float32)
    scores = scores.astype(compute_dtype)
    C = int(num_classes)
    onehot = jax.nn.one_hot(labels, C, dtype=compute_dtype)
    agg = jnp.dot(scores, onehot, preferred_element_type=jnp.float32)
    counts = jnp.zeros((C,), jnp.float32).at[labels].add(1.0)[None, :]
    mask = (counts > 0).astype(jnp.float32)
    sim = agg / (mask * counts + (1.0 - mask)) / temp
    exps = jnp.exp(sim) * mask
    probs = exps / (exps.sum(1, keepdims=True) + 1e-6)
    targets = labels[indexes]
    picked = jnp.take_along_axis(probs, targets[:, None], axis=1)[:, 0]
    return -jnp.mean(jnp.log(picked + 1e-6))


if __name__ == "__main__":
    B = 8            # batch
    num_features = 32
    num_memory = 64
    temp = 0.05
    num_clusters = 6   # static num_classes (comes from the clustering step)

    key = jax.random.PRNGKey(0)
    k1, k2, k3, k4 = jax.random.split(key, 4)

    results = jax.random.normal(k1, (B, num_features), dtype=jnp.float32)

    # Memory bank "features": deterministically initialized and L2-normalized
    # (as HybridMemory._update_feature would do).
    feats = jax.random.normal(k2, (num_memory, num_features), dtype=jnp.float32)
    feats = feats * jax.lax.rsqrt(
        jnp.maximum(jnp.sum(feats * feats, axis=1, keepdims=True), 1e-24))

    labels = jax.random.randint(k3, (num_memory,), 0, num_clusters, dtype=jnp.int32)
    indexes = jax.random.randint(k4, (B,), 0, num_memory, dtype=jnp.int32)

    loss = hybrid_memory_loss(results, feats, labels, indexes, temp, num_clusters)
    loss = jax.block_until_ready(loss)

    # Reference with the same bf16 matmul-input policy (primary correctness check).
    ref_bf16 = jax.block_until_ready(
        reference_loss(results, feats, labels, indexes, temp, num_clusters,
                       compute_dtype=jnp.bfloat16))
    # Full-f32 reference faithful to the PyTorch module (loose sanity check,
    # since the kernel feeds the MXU bf16 by design).
    ref_f32 = jax.block_until_ready(
        reference_loss(results, feats, labels, indexes, temp, num_clusters,
                       compute_dtype=jnp.float32))

    np.testing.assert_allclose(np.asarray(loss), np.asarray(ref_bf16),
                               rtol=2e-2, atol=2e-2)
    np.testing.assert_allclose(np.asarray(loss), np.asarray(ref_f32),
                               rtol=1.5e-1, atol=1.5e-1)

    print("KERNEL_OK")
</pallas_src>

<mosaic_0001>
module attributes {stable_mosaic.version = 11 : i64} {
  func.func @_partial_agg_kernel(%arg0: i32, %arg1: i32, %arg2: memref<8x128xf32, #tpu.memory_space<vmem>>, %arg3: memref<64x128xbf16, #tpu.memory_space<vmem>>, %arg4: memref<64x1xi32, #tpu.memory_space<vmem>>, %arg5: memref<1x8x128xf32, #tpu.memory_space<vmem>>, %arg6: memref<8x128xbf16, #tpu.memory_space<vmem>>) attributes {dimension_semantics = [#tpu.dimension_semantics<parallel>, #tpu.dimension_semantics<arbitrary>], iteration_bounds = array<i64: 2, 1>, scalar_prefetch = 0 : i64, scratch_operands = 1 : i64, tpu.core_type = #tpu.core_type<tc>, window_params = [{pipeline_mode = #tpu.pipeline_mode<synchronous>, transform_indices = @transform_0, window_bounds = array<i64: 8, 128>}, {transform_indices = @transform_1, window_bounds = array<i64: 64, 128>}, {transform_indices = @transform_2, window_bounds = array<i64: 64, 1>}, {transform_indices = @transform_3, window_bounds = array<i64: 1, 8, 128>}]} {
    %c0_i32 = arith.constant 0 : i32
    %0 = arith.cmpi eq, %arg1, %c0_i32 : i32
    %1 = arith.extui %0 : i1 to i32
    %c0_i32_0 = arith.constant 0 : i32
    %2 = arith.cmpi ne, %1, %c0_i32_0 : i32
    scf.if %2 {
      %c0_13 = arith.constant 0 : index
      %c0_14 = arith.constant 0 : index
      %21 = vector.load %arg2[%c0_13, %c0_14] : memref<8x128xf32, #tpu.memory_space<vmem>>, vector<8x128xf32>
      %22 = arith.mulf %21, %21 : vector<8x128xf32>
      %cst_15 = arith.constant dense<0.000000e+00> : vector<8xf32>
      %23 = vector.multi_reduction <add>, %22, %cst_15 [1] : vector<8x128xf32> to vector<8xf32>
      %24 = vector.shape_cast %23 : vector<8xf32> to vector<8x1xf32>
      %cst_16 = arith.constant 1.000000e-24 : f32
      %25 = vector.broadcast %cst_16 : f32 to vector<8x1xf32>
      %26 = arith.maximumf %24, %25 : vector<8x1xf32>
      %27 = math.rsqrt %26 : vector<8x1xf32>
      %28 = vector.broadcast %27 : vector<8x1xf32> to vector<8x128xf32>
      %29 = arith.mulf %21, %28 : vector<8x128xf32>
      %30 = arith.truncf %29 : vector<8x128xf32> to vector<8x128xbf16>
      %c0_17 = arith.constant 0 : index
      %c0_18 = arith.constant 0 : index
      %31 = vector.load %arg6[%c0_17, %c0_18] : memref<8x128xbf16, #tpu.memory_space<vmem>>, vector<8x128xbf16>
      tpu.vector_store %arg6[%c0_17, %c0_18], %30 {strides = array<i32>} : memref<8x128xbf16, #tpu.memory_space<vmem>>, vector<8x128xbf16>,
      %cst_19 = arith.constant 0.000000e+00 : f32
      %32 = vector.broadcast %cst_19 : f32 to vector<8x128xf32>
      %c0_20 = arith.constant 0 : index
      %c0_21 = arith.constant 0 : index
      %c0_22 = arith.constant 0 : index
      %33 = vector.load %arg5[%c0_20, %c0_21, %c0_22] : memref<1x8x128xf32, #tpu.memory_space<vmem>>, vector<1x8x128xf32>
      %34 = vector.shape_cast %33 : vector<1x8x128xf32> to vector<8x128xf32>
      %35 = vector.shape_cast %32 : vector<8x128xf32> to vector<1x8x128xf32>
      tpu.vector_store %arg5[%c0_20, %c0_21, %c0_22], %35 {strides = array<i32>} : memref<1x8x128xf32, #tpu.memory_space<vmem>>, vector<1x8x128xf32>,
    } else {
    }
    %c0 = arith.constant 0 : index
    %c0_1 = arith.constant 0 : index
    %3 = vector.load %arg6[%c0, %c0_1] : memref<8x128xbf16, #tpu.memory_space<vmem>>, vector<8x128xbf16>
    %c0_2 = arith.constant 0 : index
    %c0_3 = arith.constant 0 : index
    %4 = vector.load %arg3[%c0_2, %c0_3] : memref<64x128xbf16, #tpu.memory_space<vmem>>, vector<64x128xbf16>
    %cst = arith.constant dense<0.000000e+00> : vector<8x64xf32>
    %5 = tpu.matmul %3, %4, %cst {dimension_numbers = #tpu.dot_dimension_numbers<[1], [1], [0], [0], [0, 0, 1, 0], [], []>} : vector<8x128xbf16>, vector<64x128xbf16>, vector<8x64xf32> -> vector<8x64xf32>
    %c0_4 = arith.constant 0 : index
    %c0_5 = arith.constant 0 : index
    %6 = vector.load %arg4[%c0_4, %c0_5] : memref<64x1xi32, #tpu.memory_space<vmem>>, vector<64x1xi32>
    %7 = tpu.iota {dimensions = array<i32: 1>} : vector<64x128xi32>
    %8 = vector.broadcast %6 : vector<64x1xi32> to vector<64x128xi32>
    %9 = arith.cmpi eq, %8, %7 : vector<64x128xi32>
    %10 = arith.extui %9 : vector<64x128xi1> to vector<64x128xi32>
    %11 = arith.sitofp %10 : vector<64x128xi32> to vector<64x128xf32>
    %12 = arith.truncf %11 : vector<64x128xf32> to vector<64x128xbf16>
    %c0_6 = arith.constant 0 : index
    %c0_7 = arith.constant 0 : index
    %c0_8 = arith.constant 0 : index
    %13 = vector.load %arg5[%c0_6, %c0_7, %c0_8] : memref<1x8x128xf32, #tpu.memory_space<vmem>>, vector<1x8x128xf32>
    %14 = vector.shape_cast %13 : vector<1x8x128xf32> to vector<8x128xf32>
    %15 = arith.truncf %5 : vector<8x64xf32> to vector<8x64xbf16>
    %cst_9 = arith.constant dense<0.000000e+00> : vector<8x128xf32>
    %16 = tpu.matmul %15, %12, %cst_9 {dimension_numbers = #tpu.dot_dimension_numbers<[1], [0], [0], [1], [0, 0, 1, 1], [], []>} : vector<8x64xbf16>, vector<64x128xbf16>, vector<8x128xf32> -> vector<8x128xf32>
    %17 = arith.addf %14, %16 : vector<8x128xf32>
    %c0_10 = arith.constant 0 : index
    %c0_11 = arith.constant 0 : index
    %c0_12 = arith.constant 0 : index
    %18 = vector.load %arg5[%c0_10, %c0_11, %c0_12] : memref<1x8x128xf32, #tpu.memory_space<vmem>>, vector<1x8x128xf32>
    %19 = vector.shape_cast %18 : vector<1x8x128xf32> to vector<8x128xf32>
    %20 = vector.shape_cast %17 : vector<8x128xf32> to vector<1x8x128xf32>
    tpu.vector_store %arg5[%c0_10, %c0_11, %c0_12], %20 {strides = array<i32>} : memref<1x8x128xf32, #tpu.memory_space<vmem>>, vector<1x8x128xf32>,
    return
  }
  func.func @transform_0(%arg0: i32, %arg1: i32) -> (i32, i32) {
    %c0_i32 = arith.constant 0 : i32
    %c0_i32_0 = arith.constant 0 : i32
    %c0_i32_1 = arith.constant 0 : i32
    return %c0_i32, %c0_i32_0 : i32, i32
  }
  func.func @transform_1(%arg0: i32, %arg1: i32) -> (i32, i32) {
    %c1_i32 = arith.constant 1 : i32
    %0 = arith.muli %arg0, %c1_i32 : i32
    %1 = arith.addi %0, %arg1 : i32
    %c0_i32 = arith.constant 0 : i32
    %c0_i32_0 = arith.constant 0 : i32
    return %1, %c0_i32 : i32, i32
  }
  func.func @transform_2(%arg0: i32, %arg1: i32) -> (i32, i32) {
    %c1_i32 = arith.constant 1 : i32
    %0 = arith.muli %arg0, %c1_i32 : i32
    %1 = arith.addi %0, %arg1 : i32
    %c0_i32 = arith.constant 0 : i32
    %c0_i32_0 = arith.constant 0 : i32
    return %1, %c0_i32 : i32, i32
  }
  func.func @transform_3(%arg0: i32, %arg1: i32) -> (i32, i32, i32) {
    %c0_i32 = arith.constant 0 : i32
    %c0_i32_0 = arith.constant 0 : i32
    %c0_i32_1 = arith.constant 0 : i32
    return %arg0, %c0_i32, %c0_i32_0 : i32, i32, i32
  }
}

</mosaic_0001>

<bundles_post_ra>
// kernel: tpu_custom_call.1
= control target key start
LH: loop header
LB: loop body
LE: loop exit
PB: predicated region body
PF: predicated region fallthrough
CT: control target
= control target key end

     0   :  { %8 = vsyncpa [#allocation4], 0  ;;  %s786_s0 = inlined_call_operand.vmem [shape: f32[8,128], index: 0, kind: input, shape index: {}]   ;;  %s787_s1 = inlined_call_operand.vmem [shape: bf16[128,128], index: 1, kind: input, shape index: {}]   ;;  %s788_s2 = inlined_call_operand.vmem [shape: s32[128,1], index: 2, kind: input, shape index: {}]   ;;  %s789_s3 = inlined_call_operand.hbm [shape: f32[2,8,128], index: 3, kind: output, shape index: {}]  }
   0x1   :  { %10 = vsyncpa [#allocation4 + $0x1], 0  ;;  %s683_s12 = smov 0   ;;  %s685_s13 = smov 0  }
   0x2   :  { %s687_s14 = smov 0   ;;  %s689_s15 = smov 0  }
   0x3   :  { %s691_s16 = smov 0   ;;  %s693_s17 = smov 0  }
   0x4 LB: > { %s467_s18 = sadd.s32 4294967295, %s659_s17   ;;  %s468_s19 = sadd.s32 4294967294, %s659_s17   ;;  %s659_s17 = sphi %s693_s17, %s16_s17   ;;  %s655_s16 = sphi %s691_s16, %s796_s16   ;;  %s651_s15 = sphi %s689_s15, %s795_s15   ;;  %s647_s14 = sphi %s687_s14, %s794_s14   ;;  %s643_s13 = sphi %s685_s13, %s793_s13   ;;  %s639_s12 = sphi %s683_s12, %s792_s12  }
   0x5   : > { %s28_s20 = sadd.s32 1, %s655_s16  ;;  %s112_s21 = sadd.s32 1, %s647_s14 }
   0x6   : > { %p30_p0 = scmp.ge.s32.totalorder %s28_s20, 2  ;;  %p122_p1 = scmp.ne.s32.totalorder %s647_s14, %s643_s13 }
   0x7   : > { %p123_p2 = scmp.eq.s32.totalorder %s467_s18, 1  ;;  %p128_p3 = scmp.ne.s32.totalorder %s643_s13, %s639_s12 }
   0x8   : > { %s798_s20 = smov (%p30_p0, %s28_s20), 0  ;;  %p129_p5 = scmp.eq.s32.totalorder %s468_s19, 1 }
   0x9   : > { %p721_p4 = por %p123_p2, %p122_p1  ;;  %s109_s23 = ssub.s32 %s655_s16, %s798_s20 }
   0xa   : > { %p471_p6 = scmp.ge.s32.totalorder %s659_s17, 1  ;;  %p110_p7 = scmp.eq.s32.totalorder %s109_s23, 0 }
   0xb   : > { %p728_p8 = por %p129_p5, %p128_p3  ;;  %p172_p9 = scmp.lt.s32.totalorder %s659_s17, 3 }
   0xc   : > { %s734_s25 = scalar_select %p110_p7, %s647_s14, %s112_s21  }
   0xd   : > { %p173_p10 = pnand %p471_p6, %p172_p9 }
   0xe   : > { %s739_s28 = sshll.u32 (!%p173_p10), %s651_s15, 3  ;;  %s200_s11 = sand.u32 (!%p173_p10), 1, %s643_s13  }
   0xf   : > { %176 = sbr.rel (%p173_p10) target bundleno = 433 (0x1b1), region = 32  ;;  %p205_p11 = scmp.lt.s32.totalorder (!%p173_p10), %s739_s28, 15 }
  0x10   : > { %s472_s15 = sshll.u32 (!%p173_p10), %s200_s11, 3  ;;  %s383_s21 = scalar_lea.hbm (!%p173_p10), %s789_s3, %s739_s28 }
  0x11   : > { %s202_s23 = scalar_lea.vmem (!%p173_p10), [#allocation3], %s472_s15  ;;  %s387_s27 = sshll.u32 (!%p173_p10), %s383_s21, 4  ;;  %s388_s27 = int_to_ptr.hbm [resolvable:$true] %s387_s27 }
  0x12   : > { %s385_s26 = sshll.u32 (!%p173_p10), %s202_s23, 4  ;;  %s386_s26 = int_to_ptr.vmem [resolvable:$true] %s385_s26 }
  0x14   : > { %v224_v0 = vld [vmem:[%s786_s0] sm:$0xff]  ;;  %v661_v2 = vmov 0   ;;  %s206_s29 = scalar_select %p205_p11, %s739_s28, 15  ;;  %v297_v28 = vlaneseq  ;;  %v662_v33 = vmov 1.0|1.0   ;;  %vm353_vm15 = vcmask 523264  }
  0x15   : > { %v225_v1 = vmul.f32 %v224_v0, %v224_v0  ;;  %577 = vset.pattern.permute.xlu1 %v661_v2  ;;  %576 = vset.pattern.permute.xlu0 %v661_v2 }
  0x16   : > { %578 = vset.pattern.permute.xlu2 %v661_v2  ;;  %s476_s30 = sshll.u32 %s206_s29, 3  ;;  %s474_s7 = sshll.u32 %s206_s29, 2  ;;  %v298_v29 = vand.u32 127, %v297_v28 }
  0x17   : > { %226 = vadd.xlane.f32.xlu0 %v225_v1  ;;  %s216_s6 = scalar_lea.vmem %s788_s2, %s476_s30  ;;  %s208_s10 = scalar_lea.vmem %s787_s1, %s474_s7 }
  0x18   : > { %v296_v3 = vld [vmem:[%s216_s6 + $0x38] sm:$0xff]  ;;  %v293_v4 = vld [vmem:[%s216_s6 + $0x20] sm:$0xff]  ;;  %v295_v6 = vld [vmem:[%s216_s6 + $0x30] sm:$0xff]  ;;  %s373_s29 = scalar_lea.sflag [#allocation4], %s200_s11  ;;  %s595_s30 = sshra.s32 %s388_s27, 4  ;;  %s596_s30 = int_to_ptr.hbm [resolvable:$true] %s595_s30 }
  0x19   : > { %321 = vperm.xlu1 %577, %v296_v3   ;;  %v517_v5 = vld [vmem:[%s208_s10 + $0x18] sm:$0xff]  ;;  %v516_v8 = vld [vmem:[%s208_s10 + $0x10] sm:$0xff]  ;;  %v290_v9 = vld [vmem:[%s216_s6 + $0x8] sm:$0xff]  ;;  %s597_s4 = scalar_lea.hbm %s596_s30, 8  ;;  %s601_s7 = scalar_lea.hbm %s789_s3, 16 }
  0x1a   : > { %280 = vmatpush.bf16.xpose.msra.mxu0 %v517_v5  ;;  %v292_v7 = vld [vmem:[%s216_s6 + $0x18] sm:$0xff]  ;;  %v515_v10 = vld [vmem:[%s208_s10 + $0x8] sm:$0xff]  ;;  %v514_v12 = vld [vmem:[%s208_s10] sm:$0xff]  ;;  %p598_p12 = scmp.ne.s32.totalorder %s596_s30, %s597_s4  ;;  %p602_p1 = scmp.lt.s32.totalorder %s596_s30, %s789_s3 }
  0x1b   : > { %v294_v11 = vld [vmem:[%s216_s6 + $0x28] sm:$0xff]  ;;  %v291_v13 = vld [vmem:[%s216_s6 + $0x10] sm:$0xff]  ;;  %v289_v16 = vld [vmem:[%s216_s6] sm:$0xff]  ;;  %p603_p2 = scmp.lt.s32.totalorder %s601_s7, %s597_s4 }
  0x1c   : > { %315 = vperm.xlu2 %578, %v294_v11   ;;  %p599_p13 = pnand %p598_p12, %p721_p4 }
  0x1d   : > { %p604_p3 = por %p603_p2, %p602_p1 }
  0x1e   : > { %p600_p0 = pneg %p599_p13 }
  0x20   : > { %p605_p5 = pnand %p604_p3, %p600_p0 }
  0x21   : > { %312 = vperm.xlu1 %577, %v293_v4  }
  0x22   : > { %281 = vmatpush.bf16.xpose.msra.mxu0 %v516_v8 }
  0x24   : > { %306 = vperm.xlu2 %578, %v291_v13  }
  0x29   : > { %309 = vperm.xlu1 %577, %v292_v7  }
  0x2a   : > { %282 = vmatpush.bf16.xpose.msra.mxu0 %v515_v10 }
  0x2b   : > { %318 = vperm.xlu0 %576, %v295_v6  }
  0x2c   : > { %300 = vperm.xlu2 %578, %v289_v16  }
  0x31   : > { %303 = vperm.xlu1 %577, %v290_v9  }
  0x32   : > { %283 = vmatpush.bf16.xpose.msra.mxu0 %v514_v12 }
  0x76   : > { %v316_v30 = vpop.permute.xlu2 %315 }
  0x77   : > { %vm328_vm4 = vcmp.eq.s32.totalorder %v316_v30, %v298_v29 }
  0x7e   : > { %v307_v35 = vpop.permute.xlu2 %306 }
  0x7f   : > { %vm325_vm10 = vcmp.eq.s32.totalorder %v307_v35, %v298_v29 }
  0x86   : > { %v301_v37 = vpop.permute.xlu2 %300 }
  0x87   : > { %vm323_vm13 = vcmp.eq.s32.totalorder %v301_v37, %v298_v29 }
  0x8a   : > { %v227_v14 = vpop.xlane.xlu0 %226 }
  0x8b   : > { %v228_v15 = vmax.f32 %v227_v14, 1e-24  ;;  %v322_v27 = vpop.permute.xlu1 %321 }
  0x8c   : > { %vm330_vm3 = vcmp.eq.s32.totalorder %v322_v27, %v298_v29 }
  0x8d   : > { %579 = vrsqrt.f32 %v228_v15  ;;  %vm235_vm1 = vweird.f32 %v228_v15 }
  0x93   : > { %v580_v17 = vpop.eup %579  ;;  %v313_v31 = vpop.permute.xlu1 %312 }
  0x94   : > { %v230_v18 = vmul.f32 %v580_v17, %v228_v15  ;;  %vm236_vm0 = vweird.f32 %v580_v17  ;;  %vm327_vm5 = vcmp.eq.s32.totalorder %v313_v31, %v298_v29 }
  0x95   : > { %vm237_vm2 = vmor %vm235_vm1, %vm236_vm0 }
  0x96   : > { %v231_v19 = vmul.f32 %v580_v17, %v230_v18  ;;  %vm503_vm8 = vmpackc.low %vm328_vm4, %vm327_vm5 }
  0x98   : > { %v232_v20 = vmul.f32 0.5, %v231_v19 }
  0x9a   : > { %v233_v21 = vsub.f32 1.5, %v232_v20 }
  0x9b   : > { %v310_v34 = vpop.permute.xlu1 %309 }
  0x9c   : > { %v234_v22 = vmul.f32 %v580_v17, %v233_v21  ;;  %vm326_vm9 = vcmp.eq.s32.totalorder %v310_v34, %v298_v29 }
  0x9d   : > { %v319_v32 = vpop.permute.xlu0 %318  ;;  %vm505_vm11 = vmpackc.low %vm326_vm9, %vm325_vm10 }
  0x9e   : > { %v238_v23 = vsel %vm237_vm2, %v580_v17, %v234_v22  ;;  %vm329_vm6 = vcmp.eq.s32.totalorder %v319_v32, %v298_v29 }
  0x9f   : > { %v239_v24 = vmul.f32 %v238_v23, %v224_v0  ;;  %vm501_vm7 = vmpackc.low %vm330_vm3, %vm329_vm6 }
  0xa0   : > { %502 = vmatpush.bf16.msk.msra.mxu1 %vm501_vm7, %v662_v33 }
  0xa1   : > { %v240_v25 = vpack.c.bf16 %v239_v24, %v239_v24 }
  0xa3   : > { %241 = vst [vmem:[#allocation2] sm:$0xf] %v240_v25  ;;  %v304_v36 = vpop.permute.xlu1 %303 }
  0xa4   : > { %504 = vmatpush.bf16.msk.msra.mxu1 %vm503_vm8, %v662_v33  ;;  %vm324_vm12 = vcmp.eq.s32.totalorder %v304_v36, %v298_v29 }
  0xa5   : > { %vm507_vm14 = vmpackc.low %vm324_vm12, %vm323_vm13 }
  0xa8   : > { %506 = vmatpush.bf16.msk.msra.mxu1 %vm505_vm11, %v662_v33 }
  0xaa   : > { %v243_v26 = vld [vmem:[#allocation2] sm:$0xf] }
  0xab   : > { %284 = vmatmul.bf16.vlgmr.msra.gmra.mxu0 %v243_v26 }
  0xac   : > { %508 = vmatpush.bf16.msk.msra.mxu1 %vm507_vm14, %v662_v33 }
 0x128   : > { %v285_v38 = vpop.f32.mrf.mxu0 }
 0x129   : > { %v352_v39 = vpack.c.bf16 %v285_v38, %v285_v38 }
 0x12b   : > { %509 = vmatmul.msk.bf16.vlgmr.msra.gmra.mxu1 %vm353_vm15, %v352_v39 }
 0x130   : > { %v287_v40 = vpop.f32.mrf.mxu0 }
 0x1a8   : > { %v366_v41 = vpop.f32.mrf.mxu1 }
 0x1a9   : > { %371 = vst [vmem:[%s202_s23] sm:$0xff] %v366_v41 }
 0x1aa   : > { %608 = shalt.err (!%p605_p5)
}
 0x1ab   : > { %518 = dma.vmem_to_hbm [thread:$0]  (%p721_p4), %s386_s26, 128, %s388_s27, %s373_s29  }
 0x1b0   : > { %v368_v42 = vpop.f32.mrf.mxu1 }
 0x1b1 PF: > { %p524_p6 = scmp.ge.s32.totalorder %s659_s17, 2  ;;  %s399_s9 = sand.u32 1, %s639_s12  }
 0x1b2   : > { %s400_s10 = scalar_lea.sflag [#allocation4], %s399_s9 }
 0x1b3   : > { %p521_p7 = pnand %p524_p6, %p728_p8 }
 0x1b5   : > { %p522_p9 = pneg %p521_p7 }
 0x1b7   : > { %634 = dma.done.wait (%p522_p9), %s400_s10, 128  }
 0x1b8   : > { %636 = vsyncadd (%p522_p9), %s400_s10, 4294967168  ;;  %s16_s17 = sadd.s32 1, %s659_s17   ;;  %s792_s12 = smov %s643_s13 }
 0x1b9   : > { %p13_p10 = scmp.ge.s32.totalorder %s16_s17, 4   ;;  %s793_s13 = smov %s647_s14 }
 0x1ba   : > { %s794_s14 = smov %s734_s25  ;;  %s795_s15 = smov %s655_s16 }
 0x1bb   : > { %s796_s16 = smov %s798_s20  ;;  %15 = sbr.rel (!%p13_p10) target bundleno = 4 (0x4), region = 74 }
 0x1c0   :  { %406 = vsyncpa [#allocation4], 1 }
 0x1c1   :  { %408 = vsyncpa [#allocation4 + $0x1], 1 }

</bundles_post_ra>
